<compile_context>
chip_gen: v6e
topology: v6e:2x2x1
jax: 0.10.0
libtpu: 0.0.40
codegen_flags: <defaults>
</compile_context>

<pallas_src>
import jax
import jax.numpy as jnp
from jax import lax
from jax.experimental import pallas as pl
from jax.experimental.pallas import tpu as pltpu


# ---------------------------------------------------------------------------
# Kernel
# ---------------------------------------------------------------------------
def _linear_kernel(x_ref, w_ref, b_ref, o_ref):
    """One (i, j, k) grid step of  y = x @ W.T + b.

    x_ref : [TM, TK]          activations tile
    w_ref : [TN, TK]          weight tile, native nn.Linear layout (no transpose)
    b_ref : [1,  TN]          bias tile
    o_ref : [TM, TN] float32  output tile; its block index ignores k, so it
                              stays VMEM-resident across the K axis and is
                              used directly as the accumulator.
    """
    k = pl.program_id(2)

    @pl.when(k == 0)
    def _init():
        o_ref[...] = jnp.zeros_like(o_ref)

    # Contract the K (= d_emb) axis of BOTH operands: x[TM,TK] . (W[TN,TK])^T.
    # The MXU consumes the native weight layout; no HBM-side transpose exists.
    o_ref[...] += lax.dot_general(
        x_ref[...],
        w_ref[...],
        dimension_numbers=(((1,), (1,)), ((), ())),
        preferred_element_type=jnp.float32,
    )

    @pl.when(k == pl.num_programs(2) - 1)
    def _finalize():
        # Bias added exactly once, in the epilogue.
        o_ref[...] += b_ref[...].astype(jnp.float32)


# ---------------------------------------------------------------------------
# Wrapper
# ---------------------------------------------------------------------------
def _round_up(x: int, m: int) -> int:
    return ((x + m - 1) // m) * m


def _pick_tile(dim: int, cap: int, unit: int):
    """Return (tile, padded_dim).

    Pads `dim` only to the hardware minimum (`unit`), then picks the largest
    multiple-of-`unit` tile <= cap that divides the padded dim, so no dead
    rows/cols are introduced by rounding the array up to a tile multiple.
    """
    dim_p = _round_up(dim, unit)
    if dim_p <= cap:
        return dim_p, dim_p
    t = cap - (cap % unit)
    while t >= unit:
        if dim_p % t == 0:
            return t, dim_p
        t -= unit
    return unit, dim_p  # unreachable: `unit` always divides dim_p


def classifier_head(x, weight, bias, *, force_pallas: bool = False,
                    tm_cap: int = 256, tn_cap: int = 2048, tk_cap: int = 1024):
    """ClassifierHead.forward: y = x @ weight.T + bias.

    x      : [..., d_emb]
    weight : [num_class, d_emb]   (native nn.Linear layout, NOT transposed)
    bias   : [num_class]
    returns: [..., num_class] float32
    """
    orig_shape = x.shape
    d_emb = orig_shape[-1]
    num_class = weight.shape[0]
    x2 = x.reshape(-1, d_emb)
    B = x2.shape[0]

    # Tiny heads: fixed pallas_call + pad overhead dwarfs the useful work and
    # K/N padding would inflate MXU MACs -> plain JAX is strictly better.
    weight_bytes = num_class * d_emb * weight.dtype.itemsize
    if not force_pallas and weight_bytes < (1 << 20):
        out = (x2 @ weight.T + bias).astype(jnp.float32)
        return out.reshape(*orig_shape[:-1], num_class)

    # --- tile / padding selection (pad only to the hardware minimum) --------
    TM, M_pad = _pick_tile(B, tm_cap, 8)
    TK, K_pad = _pick_tile(d_emb, tk_cap, 128)
    TN, N_pad = _pick_tile(num_class, tn_cap, 128)

    # Pin both matmul operands to one compute dtype (accumulation stays f32).
    cdt = jnp.promote_types(x2.dtype, weight.dtype)

    # Zero-pad only where strictly required (zeros contribute nothing).
    x_p = x2 if (M_pad == B and K_pad == d_emb) else jnp.pad(
        x2, ((0, M_pad - B), (0, K_pad - d_emb)))
    w_p = weight if (N_pad == num_class and K_pad == d_emb) else jnp.pad(
        weight, ((0, N_pad - num_class), (0, K_pad - d_emb)))
    b_p = bias.reshape(1, num_class)
    if N_pad != num_class:
        b_p = jnp.pad(b_p, ((0, 0), (0, N_pad - num_class)))
    if x_p.dtype != cdt:
        x_p = x_p.astype(cdt)
    if w_p.dtype != cdt:
        w_p = w_p.astype(cdt)

    grid = (M_pad // TM, N_pad // TN, K_pad // TK)

    # VMEM footprint: double-buffered inputs + resident f32 output tile.
    x_it, w_it, b_it = x_p.dtype.itemsize, w_p.dtype.itemsize, b_p.dtype.itemsize
    vmem_bytes = (2 * (TM * TK * x_it + TN * TK * w_it + TN * b_it)
                  + 2 * TM * TN * 4)
    vmem_limit = min(max(vmem_bytes + vmem_bytes // 4 + (2 << 20), 16 << 20),
                     32 << 20)

    cost = pl.CostEstimate(
        flops=2 * M_pad * N_pad * K_pad,
        transcendentals=0,
        bytes_accessed=(M_pad * K_pad * x_it + N_pad * K_pad * w_it
                        + N_pad * b_it + M_pad * N_pad * 4),
    )

    out_p = pl.pallas_call(
        _linear_kernel,
        out_shape=jax.ShapeDtypeStruct((M_pad, N_pad), jnp.float32),
        grid_spec=pltpu.PrefetchScalarGridSpec(
            num_scalar_prefetch=0,
            grid=grid,
            in_specs=[
                pl.BlockSpec((TM, TK), lambda i, j, k: (i, k)),  # x tile
                pl.BlockSpec((TN, TK), lambda i, j, k: (j, k)),  # W tile (native)
                pl.BlockSpec((1, TN), lambda i, j, k: (0, j)),   # bias tile
            ],
            out_specs=pl.BlockSpec((TM, TN), lambda i, j, k: (i, j)),
        ),
        compiler_params=pltpu.CompilerParams(
            dimension_semantics=("parallel", "parallel", "arbitrary"),
            vmem_limit_bytes=vmem_limit,
        ),
        cost_estimate=cost,
    )(x_p, w_p, b_p)

    out = out_p if (M_pad == B and N_pad == num_class) else out_p[:B, :num_class]
    return out.reshape(*orig_shape[:-1], num_class)


# ---------------------------------------------------------------------------
# Self-test
# ---------------------------------------------------------------------------
if __name__ == "__main__":
    key = jax.random.PRNGKey(0)

    def make(b, d, c, k):
        kx, kw, kb = jax.random.split(k, 3)
        bound = 1.0 / (d ** 0.5)
        x = jax.random.normal(kx, (b, d), dtype=jnp.float32)
        w = jax.random.uniform(kw, (c, d), minval=-bound, maxval=bound,
                               dtype=jnp.float32)
        bb = jax.random.uniform(kb, (c,), minval=-bound, maxval=bound,
                                dtype=jnp.float32)
        return x, w, bb

    k1, k2, k3 = jax.random.split(key, 3)

    # 1) Small, tile-aligned shapes -> Pallas kernel, zero padding/copies.
    x, w, b = make(16, 128, 256, k1)
    out = jax.block_until_ready(classifier_head(x, w, b, force_pallas=True))
    ref = x @ w.T + b
    assert out.shape == (16, 256)
    assert jnp.allclose(out, ref, atol=1e-5, rtol=1e-5)

    # 2) Unaligned shapes -> Pallas kernel via the minimal-padding path.
    x, w, b = make(10, 96, 40, k2)
    out = jax.block_until_ready(classifier_head(x, w, b, force_pallas=True))
    ref = x @ w.T + b
    assert out.shape == (10, 40)
    assert jnp.allclose(out, ref, atol=1e-5, rtol=1e-5)

    # 3) Toy shapes from the module -> auto-dispatches to plain JAX (the
    #    tiled kernel only pays off once the weight is at least ~1 MiB).
    x, w, b = make(8, 32, 16, k3)
    out = jax.block_until_ready(classifier_head(x, w, b))
    ref = x @ w.T + b
    assert out.shape == (8, 16)
    assert jnp.allclose(out, ref, atol=1e-5, rtol=1e-5)

    print("KERNEL_OK")
</pallas_src>

<mosaic_0001>
module attributes {stable_mosaic.version = 11 : i64} {
  func.func @_linear_kernel(%arg0: i32, %arg1: i32, %arg2: i32, %arg3: memref<16x128xf32, #tpu.memory_space<vmem>>, %arg4: memref<256x128xf32, #tpu.memory_space<vmem>>, %arg5: memref<1x256xf32, #tpu.memory_space<vmem>>, %arg6: memref<16x256xf32, #tpu.memory_space<vmem>>) attributes {dimension_semantics = [#tpu.dimension_semantics<parallel>, #tpu.dimension_semantics<parallel>, #tpu.dimension_semantics<arbitrary>], iteration_bounds = array<i64: 1, 1, 1>, scalar_prefetch = 0 : i64, scratch_operands = 0 : i64, tpu.core_type = #tpu.core_type<tc>, window_params = [{transform_indices = @transform_0, window_bounds = array<i64: 16, 128>}, {transform_indices = @transform_1, window_bounds = array<i64: 256, 128>}, {transform_indices = @transform_2, window_bounds = array<i64: 1, 256>}, {transform_indices = @transform_3, window_bounds = array<i64: 16, 256>}]} {
    %c0_i32 = arith.constant 0 : i32
    %0 = arith.cmpi eq, %arg2, %c0_i32 : i32
    %1 = arith.extui %0 : i1 to i32
    %c0_i32_0 = arith.constant 0 : i32
    %2 = arith.cmpi ne, %1, %c0_i32_0 : i32
    scf.if %2 {
      %cst_10 = arith.constant 0.000000e+00 : f32
      %12 = vector.broadcast %cst_10 : f32 to vector<16x256xf32>
      %c0_11 = arith.constant 0 : index
      %c0_12 = arith.constant 0 : index
      %13 = vector.load %arg6[%c0_11, %c0_12] : memref<16x256xf32, #tpu.memory_space<vmem>>, vector<16x256xf32>
      tpu.vector_store %arg6[%c0_11, %c0_12], %12 {strides = array<i32>} : memref<16x256xf32, #tpu.memory_space<vmem>>, vector<16x256xf32>,
    } else {
    }
    %c0 = arith.constant 0 : index
    %c0_1 = arith.constant 0 : index
    %3 = vector.load %arg6[%c0, %c0_1] : memref<16x256xf32, #tpu.memory_space<vmem>>, vector<16x256xf32>
    %c0_2 = arith.constant 0 : index
    %c0_3 = arith.constant 0 : index
    %4 = vector.load %arg3[%c0_2, %c0_3] : memref<16x128xf32, #tpu.memory_space<vmem>>, vector<16x128xf32>
    %c0_4 = arith.constant 0 : index
    %c0_5 = arith.constant 0 : index
    %5 = vector.load %arg4[%c0_4, %c0_5] : memref<256x128xf32, #tpu.memory_space<vmem>>, vector<256x128xf32>
    %cst = arith.constant dense<0.000000e+00> : vector<16x256xf32>
    %6 = tpu.matmul %4, %5, %cst {dimension_numbers = #tpu.dot_dimension_numbers<[1], [1], [0], [0], [0, 0, 1, 0], [], []>} : vector<16x128xf32>, vector<256x128xf32>, vector<16x256xf32> -> vector<16x256xf32>
    %7 = arith.addf %3, %6 : vector<16x256xf32>
    %c0_6 = arith.constant 0 : index
    %c0_7 = arith.constant 0 : index
    %8 = vector.load %arg6[%c0_6, %c0_7] : memref<16x256xf32, #tpu.memory_space<vmem>>, vector<16x256xf32>
    tpu.vector_store %arg6[%c0_6, %c0_7], %7 {strides = array<i32>} : memref<16x256xf32, #tpu.memory_space<vmem>>, vector<16x256xf32>,
    %c0_i32_8 = arith.constant 0 : i32
    %9 = arith.cmpi eq, %arg2, %c0_i32_8 : i32
    %10 = arith.extui %9 : i1 to i32
    %c0_i32_9 = arith.constant 0 : i32
    %11 = arith.cmpi ne, %10, %c0_i32_9 : i32
    scf.if %11 {
      %c0_10 = arith.constant 0 : index
      %c0_11 = arith.constant 0 : index
      %12 = vector.load %arg6[%c0_10, %c0_11] : memref<16x256xf32, #tpu.memory_space<vmem>>, vector<16x256xf32>
      %c0_12 = arith.constant 0 : index
      %c0_13 = arith.constant 0 : index
      %13 = vector.load %arg5[%c0_12, %c0_13] : memref<1x256xf32, #tpu.memory_space<vmem>>, vector<1x256xf32>
      %14 = vector.broadcast %13 : vector<1x256xf32> to vector<16x256xf32>
      %15 = arith.addf %12, %14 : vector<16x256xf32>
      %c0_14 = arith.constant 0 : index
      %c0_15 = arith.constant 0 : index
      %16 = vector.load %arg6[%c0_14, %c0_15] : memref<16x256xf32, #tpu.memory_space<vmem>>, vector<16x256xf32>
      tpu.vector_store %arg6[%c0_14, %c0_15], %15 {strides = array<i32>} : memref<16x256xf32, #tpu.memory_space<vmem>>, vector<16x256xf32>,
    } else {
    }
    return
  }
  func.func @transform_0(%arg0: i32, %arg1: i32, %arg2: i32) -> (i32, i32) {
    %c0_i32 = arith.constant 0 : i32
    return %arg0, %arg2 : i32, i32
  }
  func.func @transform_1(%arg0: i32, %arg1: i32, %arg2: i32) -> (i32, i32) {
    %c0_i32 = arith.constant 0 : i32
    return %arg1, %arg2 : i32, i32
  }
  func.func @transform_2(%arg0: i32, %arg1: i32, %arg2: i32) -> (i32, i32) {
    %c0_i32 = arith.constant 0 : i32
    %c0_i32_0 = arith.constant 0 : i32
    return %c0_i32, %arg1 : i32, i32
  }
  func.func @transform_3(%arg0: i32, %arg1: i32, %arg2: i32) -> (i32, i32) {
    %c0_i32 = arith.constant 0 : i32
    return %arg0, %arg1 : i32, i32
  }
}

</mosaic_0001>

<bundles_post_ra>
// kernel: tpu_custom_call.1
= control target key start
LH: loop header
LB: loop body
LE: loop exit
PB: predicated region body
PF: predicated region fallthrough
CT: control target
= control target key end

     0   :  { %8 = vsyncpa [#allocation3], 0  ;;  %s408_s0 = inlined_call_operand.hbm [shape: f32[16,128], index: 0, kind: input, shape index: {}]   ;;  %s409_s1 = inlined_call_operand.hbm [shape: f32[256,128], index: 1, kind: input, shape index: {}]   ;;  %s410_s2 = inlined_call_operand.vmem [shape: f32[1,256], index: 2, kind: input, shape index: {}]   ;;  %s411_s3 = inlined_call_operand.hbm [shape: f32[16,256], index: 3, kind: output, shape index: {}]  }
   0x1   :  { %9 = vsyncpa [#allocation6], 0 }
   0x2   :  { %10 = vsyncpa [#allocation4], 0  ;;  %s361_s12 = smov [#allocation2]  }
   0x3   :  { %s16_s13 = sshll.u32 %s361_s12, 4  ;;  %s17_s13 = int_to_ptr.vmem [resolvable:$true] %s16_s13 }
   0x4   :  { %s303_s14 = scalar_lea.vmem %s17_s13, 256  ;;  %p308_p1 = scmp.lt.s32.totalorder %s17_s13, %s17_s13 }
   0x5   :  { %p304_p0 = scmp.ne.s32.totalorder %s17_s13, %s303_s14  ;;  %p309_p2 = scmp.lt.s32.totalorder %s303_s14, %s303_s14 }
   0x7   :  { %p310_p3 = por %p309_p2, %p308_p1 }
   0x9   :  { %p311_p4 = pnand %p310_p3, %p304_p0 }
   0xb   :  { %314 = shalt.err (!%p311_p4)
}
   0xc   :  { %s362_s15 = smov 128   ;;  %s363_s16 = smov 8  }
   0xd   :  { %22 = dma.hbm_to_vmem [thread:$0]  %s408_s0, 256, %s17_s13, [#allocation3], %s362_s15, %s362_s15, %s363_s16  }
   0xe   :  { %s364_s19 = smov [#allocation5]  }
   0xf   :  { %s28_s20 = sshll.u32 %s364_s19, 4  ;;  %s29_s20 = int_to_ptr.vmem [resolvable:$true] %s28_s20 }
  0x10   :  { %s323_s21 = scalar_lea.vmem %s29_s20, 4096  ;;  %p328_p6 = scmp.lt.s32.totalorder %s29_s20, %s29_s20 }
  0x11   :  { %p324_p5 = scmp.ne.s32.totalorder %s29_s20, %s323_s21  ;;  %p329_p7 = scmp.lt.s32.totalorder %s323_s21, %s323_s21 }
  0x13   :  { %p330_p8 = por %p329_p7, %p328_p6 }
  0x15   :  { %p331_p9 = pnand %p330_p8, %p324_p5 }
  0x17   :  { %334 = shalt.err (!%p331_p9)
}
  0x18   :  { %34 = dma.hbm_to_vmem [thread:$0]  %s409_s1, 4096, %s29_s20, [#allocation6], %s362_s15, %s362_s15, %s363_s16  }
  0x19   :  { %355 = dma.done.wait [#allocation3], 256  }
  0x1a   :  { %356 = vsyncadd [#allocation3], 4294967040 }
  0x1b   :  { %357 = dma.done.wait [#allocation6], 4096  }
  0x1c   :  { %358 = vsyncadd [#allocation6], 4294963200  ;;  %v88_v0 = vld [vmem:[#allocation5 + $0xf8] sm:$0xff]  ;;  %v87_v2 = vld [vmem:[#allocation5 + $0xf0] sm:$0xff]  ;;  %v183_v34 = vlaneseq  ;;  %s365_s24 = smov [#allocation7]  }
  0x1d   :  { %v72_v1 = vld [vmem:[#allocation5 + $0x78] sm:$0xff]  ;;  %219 = vmatprep.subr.mxu0 %v88_v0  ;;  %255 = vmatprep.subr.mxu1 %v88_v0  ;;  %v71_v3 = vld [vmem:[#allocation5 + $0x70] sm:$0xff]  ;;  %v86_v4 = vld [vmem:[#allocation5 + $0xe8] sm:$0xff]  ;;  %s206_s25 = sshll.u32 %s365_s24, 4  ;;  %s207_s25 = int_to_ptr.vmem [resolvable:$true] %s206_s25 }
  0x1e   :  { %220 = vmatpush3.xpose.msra.mxu0 %v72_v1  ;;  %271 = vmatpush3.xpose.msra.mxu1 %v72_v1  ;;  %v70_v5 = vld [vmem:[#allocation5 + $0x68] sm:$0xff]  ;;  %v85_v6 = vld [vmem:[#allocation5 + $0xe0] sm:$0xff]  ;;  %v394_v7 = vld [vmem:[#allocation2] sm:$0xff]  ;;  %v184_v35 = vshrl.u32 %v183_v34, 7  ;;  %s335_s26 = scalar_lea.vmem %s207_s25, 512  ;;  %p340_p11 = scmp.lt.s32.totalorder %s207_s25, %s207_s25 }
  0x1f   :  { %221 = vmatprep.subr.mxu0 %v87_v2  ;;  %256 = vmatprep.subr.mxu1 %v87_v2  ;;  %v69_v8 = vld [vmem:[#allocation5 + $0x60] sm:$0xff]  ;;  %v396_v9 = vld [vmem:[#allocation2 + $0x8] sm:$0xff]  ;;  %v83_v12 = vld [vmem:[#allocation5 + $0xd0] sm:$0xff]  ;;  %p336_p10 = scmp.ne.s32.totalorder %s207_s25, %s335_s26  ;;  %p341_p12 = scmp.lt.s32.totalorder %s335_s26, %s335_s26 }
  0x20   :  { %v84_v10 = vld [vmem:[#allocation5 + $0xd8] sm:$0xff]  ;;  %251 = vmatprep.mubr.f32.mxu0 %v394_v7  ;;  %253 = vmatprep.mubr.f32.mxu1 %v396_v9  ;;  %v67_v13 = vld [vmem:[#allocation5 + $0x50] sm:$0xff]  ;;  %v82_v14 = vld [vmem:[#allocation5 + $0xc8] sm:$0xff]  ;;  %v185_v36 = vsub.s32 0, %v184_v35  ;;  %v189_v38 = vsub.s32 1, %v184_v35 }
  0x21   :  { %v68_v11 = vld [vmem:[#allocation5 + $0x58] sm:$0xff]  ;;  %v66_v15 = vld [vmem:[#allocation5 + $0x48] sm:$0xff]  ;;  %v81_v16 = vld [vmem:[#allocation5 + $0xc0] sm:$0xff]  ;;  %p342_p13 = por %p341_p12, %p340_p11 }
  0x22   :  { %222 = vmatpush3.xpose.msra.mxu0 %v71_v3  ;;  %272 = vmatpush3.xpose.msra.mxu1 %v71_v3  ;;  %v65_v17 = vld [vmem:[#allocation5 + $0x40] sm:$0xff]  ;;  %v80_v18 = vld [vmem:[#allocation5 + $0xb8] sm:$0xff]  ;;  %v79_v20 = vld [vmem:[#allocation5 + $0xb0] sm:$0xff] }
  0x23   :  { %223 = vmatprep.subr.mxu0 %v86_v4  ;;  %257 = vmatprep.subr.mxu1 %v86_v4  ;;  %v64_v19 = vld [vmem:[#allocation5 + $0x38] sm:$0xff]  ;;  %v63_v21 = vld [vmem:[#allocation5 + $0x30] sm:$0xff]  ;;  %v78_v22 = vld [vmem:[#allocation5 + $0xa8] sm:$0xff]  ;;  %p343_p0 = pnand %p342_p13, %p336_p10 }
  0x24   :  { %v62_v23 = vld [vmem:[#allocation5 + $0x28] sm:$0xff]  ;;  %v77_v24 = vld [vmem:[#allocation5 + $0xa0] sm:$0xff]  ;;  %v76_v26 = vld [vmem:[#allocation5 + $0x98] sm:$0xff] }
  0x25   :  { %v61_v25 = vld [vmem:[#allocation5 + $0x20] sm:$0xff]  ;;  %v60_v27 = vld [vmem:[#allocation5 + $0x18] sm:$0xff]  ;;  %v75_v28 = vld [vmem:[#allocation5 + $0x90] sm:$0xff] }
  0x26   :  { %224 = vmatpush3.xpose.msra.mxu0 %v70_v5  ;;  %273 = vmatpush3.xpose.msra.mxu1 %v70_v5  ;;  %v59_v29 = vld [vmem:[#allocation5 + $0x10] sm:$0xff]  ;;  %v74_v30 = vld [vmem:[#allocation5 + $0x88] sm:$0xff]  ;;  %v73_v32 = vld [vmem:[#allocation5 + $0x80] sm:$0xff] }
  0x27   :  { %225 = vmatprep.subr.mxu0 %v85_v6  ;;  %258 = vmatprep.subr.mxu1 %v85_v6  ;;  %v58_v31 = vld [vmem:[#allocation5 + $0x8] sm:$0xff]  ;;  %v57_v33 = vld [vmem:[#allocation5] sm:$0xff]  ;;  %v181_v37 = vld [vmem:[%s410_s2] sm:$0x3] }
  0x28   :  { %v186_v39 = vrot.slane %v181_v37, %v185_v36  ;;  %v190_v42 = vrot.slane %v181_v37, %v189_v38 }
  0x2a   :  { %226 = vmatpush3.xpose.msra.mxu0 %v69_v8  ;;  %274 = vmatpush3.xpose.msra.mxu1 %v69_v8 }
  0x2b   :  { %227 = vmatprep.subr.mxu0 %v84_v10  ;;  %259 = vmatprep.subr.mxu1 %v84_v10 }
  0x2e   :  { %228 = vmatpush3.xpose.msra.mxu0 %v68_v11  ;;  %275 = vmatpush3.xpose.msra.mxu1 %v68_v11 }
  0x2f   :  { %229 = vmatprep.subr.mxu0 %v83_v12  ;;  %260 = vmatprep.subr.mxu1 %v83_v12 }
  0x32   :  { %230 = vmatpush3.xpose.msra.mxu0 %v67_v13  ;;  %276 = vmatpush3.xpose.msra.mxu1 %v67_v13 }
  0x33   :  { %231 = vmatprep.subr.mxu0 %v82_v14  ;;  %261 = vmatprep.subr.mxu1 %v82_v14 }
  0x36   :  { %232 = vmatpush3.xpose.msra.mxu0 %v66_v15  ;;  %277 = vmatpush3.xpose.msra.mxu1 %v66_v15 }
  0x37   :  { %233 = vmatprep.subr.mxu0 %v81_v16  ;;  %262 = vmatprep.subr.mxu1 %v81_v16 }
  0x3a   :  { %234 = vmatpush3.xpose.msra.mxu0 %v65_v17  ;;  %278 = vmatpush3.xpose.msra.mxu1 %v65_v17 }
  0x3b   :  { %235 = vmatprep.subr.mxu0 %v80_v18  ;;  %263 = vmatprep.subr.mxu1 %v80_v18 }
  0x3e   :  { %236 = vmatpush3.xpose.msra.mxu0 %v64_v19  ;;  %279 = vmatpush3.xpose.msra.mxu1 %v64_v19 }
  0x3f   :  { %237 = vmatprep.subr.mxu0 %v79_v20  ;;  %264 = vmatprep.subr.mxu1 %v79_v20 }
  0x42   :  { %238 = vmatpush3.xpose.msra.mxu0 %v63_v21  ;;  %280 = vmatpush3.xpose.msra.mxu1 %v63_v21 }
  0x43   :  { %239 = vmatprep.subr.mxu0 %v78_v22  ;;  %265 = vmatprep.subr.mxu1 %v78_v22 }
  0x46   :  { %240 = vmatpush3.xpose.msra.mxu0 %v62_v23  ;;  %281 = vmatpush3.xpose.msra.mxu1 %v62_v23 }
  0x47   :  { %241 = vmatprep.subr.mxu0 %v77_v24  ;;  %266 = vmatprep.subr.mxu1 %v77_v24 }
  0x4a   :  { %242 = vmatpush3.xpose.msra.mxu0 %v61_v25  ;;  %282 = vmatpush3.xpose.msra.mxu1 %v61_v25 }
  0x4b   :  { %243 = vmatprep.subr.mxu0 %v76_v26  ;;  %267 = vmatprep.subr.mxu1 %v76_v26 }
  0x4e   :  { %244 = vmatpush3.xpose.msra.mxu0 %v60_v27  ;;  %283 = vmatpush3.xpose.msra.mxu1 %v60_v27 }
  0x4f   :  { %245 = vmatprep.subr.mxu0 %v75_v28  ;;  %268 = vmatprep.subr.mxu1 %v75_v28 }
  0x52   :  { %246 = vmatpush3.xpose.msra.mxu0 %v59_v29  ;;  %284 = vmatpush3.xpose.msra.mxu1 %v59_v29 }
  0x53   :  { %247 = vmatprep.subr.mxu0 %v74_v30  ;;  %269 = vmatprep.subr.mxu1 %v74_v30 }
  0x56   :  { %248 = vmatpush3.xpose.msra.mxu0 %v58_v31  ;;  %285 = vmatpush3.xpose.msra.mxu1 %v58_v31 }
  0x57   :  { %249 = vmatprep.subr.mxu0 %v73_v32  ;;  %270 = vmatprep.subr.mxu1 %v73_v32 }
  0x5a   :  { %250 = vmatpush3.xpose.msra.mxu0 %v57_v33  ;;  %286 = vmatpush3.xpose.msra.mxu1 %v57_v33 }
  0x5d   :  { %252 = vmatmul.mubr.f32.vlgmr.msra.gmra.mxu0 %v394_v7  ;;  %254 = vmatmul.mubr.f32.vlgmr.msra.gmra.mxu1 %v396_v9 }
 0x11d   :  { %v155_v40 = vpop.f32.mrf.mxu0  ;;  %v161_v41 = vpop.f32.mrf.mxu1 }
 0x11e   :  { %v193_v45 = vadd.f32 %v186_v39, %v155_v40  ;;  %v195_v46 = vadd.f32 %v186_v39, %v161_v41 }
 0x11f   :  { %v157_v43 = vpop.f32.mrf.mxu0  ;;  %v163_v44 = vpop.f32.mrf.mxu1 }
 0x120   :  { %197 = vst [vmem:[#allocation7] sm:$0xff] %v193_v45  ;;  %199 = vst [vmem:[#allocation7 + $0x10] sm:$0xff] %v195_v46  ;;  %v194_v47 = vadd.f32 %v190_v42, %v157_v43  ;;  %v196_v48 = vadd.f32 %v190_v42, %v163_v44 }
 0x122   :  { %198 = vst [vmem:[#allocation7 + $0x8] sm:$0xff] %v194_v47  ;;  %200 = vst [vmem:[#allocation7 + $0x18] sm:$0xff] %v196_v48 }
 0x123   :  { %346 = shalt.err (!%p343_p0)
}
 0x124   :  { %s366_s2 = smov 256   ;;  %s367_s27 = smov 16  }
 0x125   :  { %212 = dma.vmem_to_hbm [thread:$0]  %s207_s25, 512, %s411_s3, [#allocation4], %s366_s2, %s366_s2, %s367_s27  }
 0x126   :  { %359 = dma.done.wait [#allocation4], 512  }
 0x127   :  { %360 = vsyncadd [#allocation4], 4294966784 }
 0x128   :  { %216 = vsyncpa [#allocation3], 1 }
 0x129   :  { %217 = vsyncpa [#allocation6], 1 }
 0x12a   :  { %218 = vsyncpa [#allocation4], 1 }

</bundles_post_ra>
